<compile_context>
chip_gen: v7x
topology: tpu7x:2x2x1
jax: 0.10.0
libtpu: 0.0.40
codegen_flags: <defaults>
</compile_context>

<pallas_src>
import functools

import jax
import jax.numpy as jnp
from jax.experimental import pallas as pl
from jax.experimental.pallas import tpu as pltpu


# ----------------------------------------------------------------------------
# Pallas kernels
# ----------------------------------------------------------------------------
def _spectral_kernel(re_ref, im_ref, wr_ref, wi_ref, ore_ref, oim_ref):
    """Complex product Fv @ R on lane-folded Re/Im operands.

    re_ref / im_ref   : (TM, F*C)   bf16, F spatial rows folded into lanes
    wr_ref / wi_ref   : (F*C, F*C)  bf16 block-diagonal kron(I_F, Rr / Ri)
    ore_ref / oim_ref : (TM, F*C)   f32  Re / Im of Fv @ R, same folded layout
    """
    re = re_ref[...]
    im = im_ref[...]
    wr = wr_ref[...]
    wi = wi_ref[...]
    ore_ref[...] = (jnp.dot(re, wr, preferred_element_type=jnp.float32)
                    - jnp.dot(im, wi, preferred_element_type=jnp.float32))
    oim_ref[...] = (jnp.dot(re, wi, preferred_element_type=jnp.float32)
                    + jnp.dot(im, wr, preferred_element_type=jnp.float32))


def _linear_gelu_kernel(x_ref, w_ref, b_ref, vf_ref, o_ref):
    """h = GELU(x @ W.T + b + v_f), exact (erf) GELU matching nn.GELU()."""
    v_l = jnp.dot(x_ref[...], w_ref[...],
                  preferred_element_type=jnp.float32) + b_ref[...]
    s = v_l + vf_ref[...]
    # TODO(synk): switch to tanh-approx GELU (EUP slot) only if the erf VPU
    # polynomial ever dominates and strict nn.GELU() parity is not required.
    o_ref[...] = 0.5 * s * (1.0 + jax.lax.erf(s * 0.7071067811865475))


# ----------------------------------------------------------------------------
# Tiling / layout helpers
# ----------------------------------------------------------------------------
def _choose_tiling(m_rows, target_rows):
    """Tile the folded-row axis: returns (tile, padded_rows, grid).

    tile is a multiple of 8 (sublane granularity) and padded_rows is a
    multiple of tile (so there is never a single oversized full-M block).
    When possible the grid is kept >= 2 so the single "parallel" grid axis can
    shard across both TensorCores on v7x.
    """
    full8 = ((m_rows + 7) // 8) * 8
    tile = max(8, min((target_rows // 8) * 8, full8))
    if (full8 + tile - 1) // tile == 1 and tile >= 16:
        tile = max(8, ((tile // 2) // 8) * 8)
    padded = ((m_rows + tile - 1) // tile) * tile
    grid = padded // tile
    return tile, padded, grid


def _fold(a2d, rows_pad, fold, dtype):
    """(M, C) row-major -> (rows_pad, fold*C), zero-padding trailing rows."""
    m, c = a2d.shape
    total = rows_pad * fold
    if total != m:
        a2d = jnp.pad(a2d, ((0, total - m), (0, 0)))
    return a2d.reshape(rows_pad, fold * c).astype(dtype)


def _unfold(a_folded, m, c):
    """(rows_pad, fold*C) -> (M, C), dropping any padded rows."""
    return a_folded.reshape(-1, c)[:m]


def _vmem_limit_bytes(*byte_counts):
    tile = sum(byte_counts)
    # ~2x for double buffering plus compiler-internal headroom; floor 32 MiB;
    # cap 48 MiB so we never request all of v7x's 64 MiB physical VMEM.
    return int(min(max(4 * tile + (8 << 20), 32 << 20), 48 << 20))


# ----------------------------------------------------------------------------
# Wrapper (FourierBlock.forward)
# ----------------------------------------------------------------------------
@functools.partial(jax.jit, static_argnames=("block_m",))
def fourier_block_forward(x, lin_w, lin_b, r_real, r_imag, *, block_m=16384):
    """x: (B, H, W, Cin) float32 -> (B, H, W, Cout) float32."""
    B, H, Wd, C = x.shape
    Cout = lin_w.shape[0]
    if C != Cout:
        raise ValueError("FourierBlock requires in_channels == out_channels "
                         "for v_l + v_f (same constraint as the PyTorch module).")
    M = B * H * Wd

    # Lane folding: pack F spatial rows into one (ideally 128-wide) lane row.
    F = max(1, 128 // C)
    Wlane = F * C                                   # == 128 when C | 128
    mf = (M + F - 1) // F                           # folded rows
    tmf, mf_pad, grid_m = _choose_tiling(mf, max(8, block_m // F))

    row_spec = pl.BlockSpec((tmf, Wlane), lambda i: (i, 0))
    mat_spec = pl.BlockSpec((Wlane, Wlane), lambda i: (0, 0))
    eye_f = jnp.eye(F, dtype=jnp.float32)

    # ---- Fourier transform (glue) -------------------------------------------
    # TODO(synk): fftn/irfftn stay in XLA; there is no Pallas TPU FFT primitive.
    # (Like torch.fft.fftn's default, this transforms ALL dims incl. batch.)
    Fv = jnp.fft.fftn(x)                            # complex64
    re_f = _fold(jnp.real(Fv).reshape(M, C), mf_pad, F, jnp.bfloat16)
    im_f = _fold(jnp.imag(Fv).reshape(M, C), mf_pad, F, jnp.bfloat16)
    wr_bd = jnp.kron(eye_f, r_real).astype(jnp.bfloat16)    # (Wlane, Wlane)
    wi_bd = jnp.kron(eye_f, r_imag).astype(jnp.bfloat16)

    out_re, out_im = pl.pallas_call(
        _spectral_kernel,
        out_shape=(jax.ShapeDtypeStruct((mf_pad, Wlane), jnp.float32),
                   jax.ShapeDtypeStruct((mf_pad, Wlane), jnp.float32)),
        grid=(grid_m,),
        in_specs=[row_spec, row_spec, mat_spec, mat_spec],
        out_specs=[row_spec, row_spec],
        compiler_params=pltpu.CompilerParams(
            dimension_semantics=("parallel",),
            vmem_limit_bytes=_vmem_limit_bytes(
                2 * tmf * Wlane * 2,                # re + im tiles (bf16)
                2 * Wlane * Wlane * 2,              # weight tiles (bf16)
                2 * tmf * Wlane * 4)),              # two f32 output tiles
        cost_estimate=pl.CostEstimate(
            flops=8 * mf_pad * Wlane * Wlane,
            transcendentals=0,
            bytes_accessed=(2 * mf_pad * Wlane * 2 + 2 * Wlane * Wlane * 2
                            + 2 * mf_pad * Wlane * 4)),
    )(re_f, im_f, wr_bd, wi_bd)

    RFv = jax.lax.complex(_unfold(out_re, M, C),
                          _unfold(out_im, M, C)).reshape(B, H, Wd, C)
    # irfftn back to the ORIGINAL x.size() (torch semantics): the last axis is
    # cropped to C//2+1 bins and a real array of shape x.shape is returned.
    v_f = jnp.fft.irfftn(RFv, s=x.shape).astype(jnp.float32)

    # ---- fused linear + add + GELU ------------------------------------------
    x_f = _fold(x.reshape(M, C), mf_pad, F, jnp.bfloat16)
    # v_f is an elementwise-only (non-matmul) operand; kept f32 for numerical
    # headroom on the v_l + v_f add (cast to bf16 too if tolerance allows).
    vf_f = _fold(v_f.reshape(M, C), mf_pad, F, jnp.float32)
    wl_bd = jnp.kron(eye_f, lin_w.T).astype(jnp.bfloat16)   # (Wlane, Wlane)
    b_t = jnp.tile(lin_b.astype(jnp.float32), F).reshape(1, Wlane)

    h = pl.pallas_call(
        _linear_gelu_kernel,
        out_shape=jax.ShapeDtypeStruct((mf_pad, Wlane), jnp.float32),
        grid=(grid_m,),
        in_specs=[row_spec, mat_spec,
                  pl.BlockSpec((1, Wlane), lambda i: (0, 0)),
                  row_spec],
        out_specs=row_spec,
        compiler_params=pltpu.CompilerParams(
            dimension_semantics=("parallel",),
            vmem_limit_bytes=_vmem_limit_bytes(
                tmf * Wlane * 2,                    # x tile (bf16)
                Wlane * Wlane * 2 + Wlane * 4,      # weight + bias
                tmf * Wlane * 4,                    # v_f tile (f32)
                tmf * Wlane * 4)),                  # output tile (f32)
        cost_estimate=pl.CostEstimate(
            flops=2 * mf_pad * Wlane * Wlane + 10 * mf_pad * Wlane,
            transcendentals=mf_pad * Wlane,
            bytes_accessed=(mf_pad * Wlane * (2 + 4 + 4)
                            + Wlane * Wlane * 2 + Wlane * 4)),
    )(x_f, wl_bd, b_t, vf_f)

    return _unfold(h, M, C).reshape(B, H, Wd, C)


# ----------------------------------------------------------------------------
# Pure-JAX reference of the PyTorch forward (f32 HIGHEST precision).
# ----------------------------------------------------------------------------
def _reference(x, lin_w, lin_b, r_real, r_imag):
    hi = jax.lax.Precision.HIGHEST
    R = jax.lax.complex(r_real, r_imag)
    v_l = jnp.matmul(x, lin_w.T, precision=hi) + lin_b
    Fv = jnp.fft.fftn(x)
    RFv = jnp.matmul(Fv, R, precision=hi)
    v_f = jnp.fft.irfftn(RFv, s=x.shape)
    return jax.nn.gelu(v_l + v_f, approximate=False)


if __name__ == "__main__":
    # Small deterministic problem; M = B*H*W = 2048 -> 128 folded rows,
    # tiled into 2 parallel grid steps of 64 rows x 128 lanes.
    B, H, Wd, C_IN = 2, 32, 32, 8
    C_OUT = C_IN  # required for v_l + v_f (as in the PyTorch module)

    key = jax.random.PRNGKey(0)
    kx, kr1, kr2, kw, kb = jax.random.split(key, 5)

    x = jax.random.uniform(kx, (B, H, Wd, C_IN), dtype=jnp.float32)

    # FourierConv.R = torch.rand(cfloat): real & imag ~ U[0,1)
    r_real = jax.random.uniform(kr1, (C_IN, C_OUT), dtype=jnp.float32)
    r_imag = jax.random.uniform(kr2, (C_IN, C_OUT), dtype=jnp.float32)

    # nn.Linear default init: U(-1/sqrt(fan_in), 1/sqrt(fan_in))
    bound = 1.0 / (C_IN ** 0.5)
    lin_w = jax.random.uniform(kw, (C_OUT, C_IN), dtype=jnp.float32,
                               minval=-bound, maxval=bound)
    lin_b = jax.random.uniform(kb, (C_OUT,), dtype=jnp.float32,
                               minval=-bound, maxval=bound)

    out = jax.block_until_ready(
        fourier_block_forward(x, lin_w, lin_b, r_real, r_imag))
    ref = jax.block_until_ready(_reference(x, lin_w, lin_b, r_real, r_imag))

    assert out.shape == (B, H, Wd, C_OUT)
    assert out.dtype == jnp.float32
    # Kernel matmul operands are bf16 (f32 accumulation); tolerance covers
    # that vs the f32 HIGHEST-precision reference.
    assert jnp.allclose(out, ref, rtol=3e-2, atol=3e-2), (
        float(jnp.max(jnp.abs(out - ref))))

    print("KERNEL_OK")
</pallas_src>

<mosaic_0001>
module attributes {stable_mosaic.version = 11 : i64} {
  func.func @_spectral_kernel(%arg0: i32, %arg1: memref<64x128xbf16, #tpu.memory_space<vmem>>, %arg2: memref<64x128xbf16, #tpu.memory_space<vmem>>, %arg3: memref<128x128xbf16, #tpu.memory_space<vmem>>, %arg4: memref<128x128xbf16, #tpu.memory_space<vmem>>, %arg5: memref<64x128xf32, #tpu.memory_space<vmem>>, %arg6: memref<64x128xf32, #tpu.memory_space<vmem>>) attributes {dimension_semantics = [#tpu.dimension_semantics<parallel>], iteration_bounds = array<i64: 2>, scalar_prefetch = 0 : i64, scratch_operands = 0 : i64, tpu.core_type = #tpu.core_type<tc>, window_params = [{transform_indices = @transform_0, window_bounds = array<i64: 64, 128>}, {transform_indices = @transform_1, window_bounds = array<i64: 64, 128>}, {pipeline_mode = #tpu.pipeline_mode<synchronous>, transform_indices = @transform_2, window_bounds = array<i64: 128, 128>}, {pipeline_mode = #tpu.pipeline_mode<synchronous>, transform_indices = @transform_3, window_bounds = array<i64: 128, 128>}, {transform_indices = @transform_4, window_bounds = array<i64: 64, 128>}, {transform_indices = @transform_5, window_bounds = array<i64: 64, 128>}]} {
    %c0 = arith.constant 0 : index
    %c0_0 = arith.constant 0 : index
    %0 = vector.load %arg1[%c0, %c0_0] : memref<64x128xbf16, #tpu.memory_space<vmem>>, vector<64x128xbf16>
    %c0_1 = arith.constant 0 : index
    %c0_2 = arith.constant 0 : index
    %1 = vector.load %arg2[%c0_1, %c0_2] : memref<64x128xbf16, #tpu.memory_space<vmem>>, vector<64x128xbf16>
    %c0_3 = arith.constant 0 : index
    %c0_4 = arith.constant 0 : index
    %2 = vector.load %arg3[%c0_3, %c0_4] : memref<128x128xbf16, #tpu.memory_space<vmem>>, vector<128x128xbf16>
    %c0_5 = arith.constant 0 : index
    %c0_6 = arith.constant 0 : index
    %3 = vector.load %arg4[%c0_5, %c0_6] : memref<128x128xbf16, #tpu.memory_space<vmem>>, vector<128x128xbf16>
    %cst = arith.constant dense<0.000000e+00> : vector<64x128xf32>
    %4 = tpu.matmul %0, %2, %cst {dimension_numbers = #tpu.dot_dimension_numbers<[1], [0], [0], [1], [0, 0, 1, 1], [], []>} : vector<64x128xbf16>, vector<128x128xbf16>, vector<64x128xf32> -> vector<64x128xf32>
    %cst_7 = arith.constant dense<0.000000e+00> : vector<64x128xf32>
    %5 = tpu.matmul %1, %3, %cst_7 {dimension_numbers = #tpu.dot_dimension_numbers<[1], [0], [0], [1], [0, 0, 1, 1], [], []>} : vector<64x128xbf16>, vector<128x128xbf16>, vector<64x128xf32> -> vector<64x128xf32>
    %6 = arith.subf %4, %5 : vector<64x128xf32>
    %c0_8 = arith.constant 0 : index
    %c0_9 = arith.constant 0 : index
    %7 = vector.load %arg5[%c0_8, %c0_9] : memref<64x128xf32, #tpu.memory_space<vmem>>, vector<64x128xf32>
    tpu.vector_store %arg5[%c0_8, %c0_9], %6 {strides = array<i32>} : memref<64x128xf32, #tpu.memory_space<vmem>>, vector<64x128xf32>,
    %cst_10 = arith.constant dense<0.000000e+00> : vector<64x128xf32>
    %8 = tpu.matmul %0, %3, %cst_10 {dimension_numbers = #tpu.dot_dimension_numbers<[1], [0], [0], [1], [0, 0, 1, 1], [], []>} : vector<64x128xbf16>, vector<128x128xbf16>, vector<64x128xf32> -> vector<64x128xf32>
    %cst_11 = arith.constant dense<0.000000e+00> : vector<64x128xf32>
    %9 = tpu.matmul %1, %2, %cst_11 {dimension_numbers = #tpu.dot_dimension_numbers<[1], [0], [0], [1], [0, 0, 1, 1], [], []>} : vector<64x128xbf16>, vector<128x128xbf16>, vector<64x128xf32> -> vector<64x128xf32>
    %10 = arith.addf %8, %9 : vector<64x128xf32>
    %c0_12 = arith.constant 0 : index
    %c0_13 = arith.constant 0 : index
    %11 = vector.load %arg6[%c0_12, %c0_13] : memref<64x128xf32, #tpu.memory_space<vmem>>, vector<64x128xf32>
    tpu.vector_store %arg6[%c0_12, %c0_13], %10 {strides = array<i32>} : memref<64x128xf32, #tpu.memory_space<vmem>>, vector<64x128xf32>,
    return
  }
  func.func @transform_0(%arg0: i32) -> (i32, i32) {
    %c0_i32 = arith.constant 0 : i32
    %c0_i32_0 = arith.constant 0 : i32
    return %arg0, %c0_i32 : i32, i32
  }
  func.func @transform_1(%arg0: i32) -> (i32, i32) {
    %c0_i32 = arith.constant 0 : i32
    %c0_i32_0 = arith.constant 0 : i32
    return %arg0, %c0_i32 : i32, i32
  }
  func.func @transform_2(%arg0: i32) -> (i32, i32) {
    %c0_i32 = arith.constant 0 : i32
    %c0_i32_0 = arith.constant 0 : i32
    %c0_i32_1 = arith.constant 0 : i32
    return %c0_i32, %c0_i32_0 : i32, i32
  }
  func.func @transform_3(%arg0: i32) -> (i32, i32) {
    %c0_i32 = arith.constant 0 : i32
    %c0_i32_0 = arith.constant 0 : i32
    %c0_i32_1 = arith.constant 0 : i32
    return %c0_i32, %c0_i32_0 : i32, i32
  }
  func.func @transform_4(%arg0: i32) -> (i32, i32) {
    %c0_i32 = arith.constant 0 : i32
    %c0_i32_0 = arith.constant 0 : i32
    return %arg0, %c0_i32 : i32, i32
  }
  func.func @transform_5(%arg0: i32) -> (i32, i32) {
    %c0_i32 = arith.constant 0 : i32
    %c0_i32_0 = arith.constant 0 : i32
    return %arg0, %c0_i32 : i32, i32
  }
}

module attributes {stable_mosaic.version = 11 : i64} {
  func.func @_linear_gelu_kernel(%arg0: i32, %arg1: memref<64x128xbf16, #tpu.memory_space<vmem>>, %arg2: memref<128x128xbf16, #tpu.memory_space<vmem>>, %arg3: memref<1x128xf32, #tpu.memory_space<vmem>>, %arg4: memref<64x128xf32, #tpu.memory_space<vmem>>, %arg5: memref<64x128xf32, #tpu.memory_space<vmem>>) attributes {dimension_semantics = [#tpu.dimension_semantics<parallel>], iteration_bounds = array<i64: 2>, scalar_prefetch = 0 : i64, scratch_operands = 0 : i64, tpu.core_type = #tpu.core_type<tc>, window_params = [{transform_indices = @transform_0, window_bounds = array<i64: 64, 128>}, {pipeline_mode = #tpu.pipeline_mode<synchronous>, transform_indices = @transform_1, window_bounds = array<i64: 128, 128>}, {pipeline_mode = #tpu.pipeline_mode<synchronous>, transform_indices = @transform_2, window_bounds = array<i64: 1, 128>}, {transform_indices = @transform_3, window_bounds = array<i64: 64, 128>}, {transform_indices = @transform_4, window_bounds = array<i64: 64, 128>}]} {
    %c0 = arith.constant 0 : index
    %c0_0 = arith.constant 0 : index
    %0 = vector.load %arg1[%c0, %c0_0] : memref<64x128xbf16, #tpu.memory_space<vmem>>, vector<64x128xbf16>
    %c0_1 = arith.constant 0 : index
    %c0_2 = arith.constant 0 : index
    %1 = vector.load %arg2[%c0_1, %c0_2] : memref<128x128xbf16, #tpu.memory_space<vmem>>, vector<128x128xbf16>
    %cst = arith.constant dense<0.000000e+00> : vector<64x128xf32>
    %2 = tpu.matmul %0, %1, %cst {dimension_numbers = #tpu.dot_dimension_numbers<[1], [0], [0], [1], [0, 0, 1, 1], [], []>} : vector<64x128xbf16>, vector<128x128xbf16>, vector<64x128xf32> -> vector<64x128xf32>
    %c0_3 = arith.constant 0 : index
    %c0_4 = arith.constant 0 : index
    %3 = vector.load %arg3[%c0_3, %c0_4] : memref<1x128xf32, #tpu.memory_space<vmem>>, vector<1x128xf32>
    %4 = vector.broadcast %3 : vector<1x128xf32> to vector<64x128xf32>
    %5 = arith.addf %2, %4 : vector<64x128xf32>
    %c0_5 = arith.constant 0 : index
    %c0_6 = arith.constant 0 : index
    %6 = vector.load %arg4[%c0_5, %c0_6] : memref<64x128xf32, #tpu.memory_space<vmem>>, vector<64x128xf32>
    %7 = arith.addf %5, %6 : vector<64x128xf32>
    %cst_7 = arith.constant 5.000000e-01 : f32
    %8 = vector.broadcast %cst_7 : f32 to vector<64x128xf32>
    %9 = arith.mulf %8, %7 : vector<64x128xf32>
    %cst_8 = arith.constant 0.707106769 : f32
    %10 = vector.broadcast %cst_8 : f32 to vector<64x128xf32>
    %11 = arith.mulf %7, %10 : vector<64x128xf32>
    %12 = math.erf %11 : vector<64x128xf32>
    %cst_9 = arith.constant 1.000000e+00 : f32
    %13 = vector.broadcast %cst_9 : f32 to vector<64x128xf32>
    %14 = arith.addf %13, %12 : vector<64x128xf32>
    %15 = arith.mulf %9, %14 : vector<64x128xf32>
    %c0_10 = arith.constant 0 : index
    %c0_11 = arith.constant 0 : index
    %16 = vector.load %arg5[%c0_10, %c0_11] : memref<64x128xf32, #tpu.memory_space<vmem>>, vector<64x128xf32>
    tpu.vector_store %arg5[%c0_10, %c0_11], %15 {strides = array<i32>} : memref<64x128xf32, #tpu.memory_space<vmem>>, vector<64x128xf32>,
    return
  }
  func.func @transform_0(%arg0: i32) -> (i32, i32) {
    %c0_i32 = arith.constant 0 : i32
    %c0_i32_0 = arith.constant 0 : i32
    return %arg0, %c0_i32 : i32, i32
  }
  func.func @transform_1(%arg0: i32) -> (i32, i32) {
    %c0_i32 = arith.constant 0 : i32
    %c0_i32_0 = arith.constant 0 : i32
    %c0_i32_1 = arith.constant 0 : i32
    return %c0_i32, %c0_i32_0 : i32, i32
  }
  func.func @transform_2(%arg0: i32) -> (i32, i32) {
    %c0_i32 = arith.constant 0 : i32
    %c0_i32_0 = arith.constant 0 : i32
    %c0_i32_1 = arith.constant 0 : i32
    return %c0_i32, %c0_i32_0 : i32, i32
  }
  func.func @transform_3(%arg0: i32) -> (i32, i32) {
    %c0_i32 = arith.constant 0 : i32
    %c0_i32_0 = arith.constant 0 : i32
    return %arg0, %c0_i32 : i32, i32
  }
  func.func @transform_4(%arg0: i32) -> (i32, i32) {
    %c0_i32 = arith.constant 0 : i32
    %c0_i32_0 = arith.constant 0 : i32
    return %arg0, %c0_i32 : i32, i32
  }
}

</mosaic_0001>

<bundles_post_ra>
// kernel: tile.8
= control target key start
LH: loop header
LB: loop body
LE: loop exit
PB: predicated region body
PF: predicated region fallthrough
CT: control target
= control target key end

     0   :  { %2 = vsyncpa [#allocation1], 0  ;;  %s47_s6 = smov [#allocation0]   ;;  %s76_s0 = inlined_call_operand.hbm [shape: f32[8], index: 0, kind: input, shape index: {}]   ;;  %s77_s1 = inlined_call_operand.vmem [shape: f32[16,8], index: 1, kind: output, shape index: {}]  }
   0x1   :  { %s9_s7 = sshll.u32 %s47_s6, 4  ;;  %s23_s10 = scalar_lea.hbm %s76_s0, 16  ;;  %s10_s7 = int_to_ptr.vmem [resolvable:$true] %s9_s7 }
   0x2   :  { %p24_p0 = scmp.ne.s32.totalorder %s76_s0, %s23_s10  ;;  %p27_p1 = scmp.lt.u32.totalorder %s23_s10, %s76_s0 }
   0x4   :  { %p29_p2 = pnand %p27_p1, %p24_p0 }
   0x6   :  { %32 = shalt.err (!%p29_p2)
}
   0x7   :  { %s33_s15 = scalar_lea.vmem %s10_s7, 16  ;;  %s37_s16 = scalar_lea.vmem %s10_s7, 32 }
   0x8   :  { %p34_p3 = scmp.ne.s32.totalorder %s10_s7, %s33_s15  ;;  %p38_p4 = scmp.lt.s32.totalorder %s10_s7, %s10_s7 }
   0x9   :  { %p39_p5 = scmp.lt.s32.totalorder %s37_s16, %s33_s15 }
   0xb   :  { %p40_p6 = por %p39_p5, %p38_p4 }
   0xd   :  { %p41_p7 = pnand %p40_p6, %p34_p3 }
   0xf   :  { %44 = shalt.err (!%p41_p7)
}
  0x10   :  { %12 = dma.hbm_to_vmem [thread:$0]  %s76_s0, 16, %s10_s7, [#allocation1]  }
  0x11   :  { %45 = dma.done.wait [#allocation1], 16  }
  0x12   :  { %46 = vsyncadd [#allocation1], 4294967280  ;;  %v16_v0 = vld [vmem:[#allocation0] ss:$0 sm:$0xff] }
  0x13   :  { %17 = vst [vmem:[%s77_s1] sm:$0xff] %v16_v0  ;;  %21 = vst [vmem:[%s77_s1 + $0x8] sm:$0xff] %v16_v0 }
  0x14   :  { %20 = vsyncpa [#allocation1], 1 }

// kernel: tile.9
= control target key start
LH: loop header
LB: loop body
LE: loop exit
PB: predicated region body
PF: predicated region fallthrough
CT: control target
= control target key end

     0   :  { %s131_s10 = smov 120   ;;  %s132_s11 = smov 104   ;;  %vm3_vm0 = vcmask 64512   ;;  %vm9_vm1 = vcmask 1048512   ;;  %vm15_vm2 = vcmask 982912   ;;  %vm21_vm3 = vcmask 917312   ;;  %s207_s0 = inlined_call_operand.vmem [shape: f32[16,8], index: 0, kind: input, shape index: {}]   ;;  %s208_s1 = inlined_call_operand.vmem [shape: f32[1,128], index: 1, kind: output, shape index: {}]  }
   0x1   :  { %v101_v0 = vld [vmem:[%s207_s0 + $0xf] sm:$0x1]   ;;  %v103_v1 = vld [vmem:[%s207_s0 + $0xd] sm:$0x1]   ;;  %v102_v2 = vld [vmem:[%s207_s0 + $0xe] sm:$0x1]  }
   0x2   :  { %7 = vrot.lane.b32.xlu0 %v101_v0, %s131_s10  ;;  %19 = vrot.lane.b32.xlu1 %v103_v1, %s132_s11  ;;  %v104_v3 = vld [vmem:[%s207_s0 + $0xc] sm:$0x1]   ;;  %s133_s16 = smov 112   ;;  %s134_s17 = smov 96   ;;  %v105_v4 = vld [vmem:[%s207_s0 + $0xb] sm:$0x1]  }
   0x3   :  { %v106_v5 = vld [vmem:[%s207_s0 + $0xa] sm:$0x1]   ;;  %v2_v6 = vld [vmem:[%s207_s0] sm:$0x1]   ;;  %s135_s24 = smov 88   ;;  %s136_s25 = smov 80  }
   0x4   :  { %4 = vst.msk [vmem:[#allocation0] sm:$0x1] %vm3_vm0, %v2_v6   ;;  %v107_v7 = vld [vmem:[%s207_s0 + $0x9] sm:$0x1]   ;;  %v108_v8 = vld [vmem:[%s207_s0 + $0x8] sm:$0x1]  }
   0x5   :  { %s137_s30 = smov 72   ;;  %s138_s2 = smov 64   ;;  %v109_v9 = vld [vmem:[%s207_s0 + $0x7] sm:$0x1]   ;;  %v110_v10 = vld [vmem:[%s207_s0 + $0x6] sm:$0x1]  }
   0x6   :  { %13 = vrot.lane.b32.xlu0 %v102_v2, %s133_s16  ;;  %25 = vrot.lane.b32.xlu1 %v104_v3, %s134_s17  ;;  %s139_s7 = smov 56   ;;  %s140_s8 = smov 48   ;;  %v111_v11 = vld [vmem:[%s207_s0 + $0x5] sm:$0x1]   ;;  %v112_v12 = vld [vmem:[%s207_s0 + $0x4] sm:$0x1]  }
   0x7   :  { %s141_s13 = smov 40   ;;  %s142_s14 = smov 32   ;;  %v113_v13 = vld [vmem:[%s207_s0 + $0x3] sm:$0x1]   ;;  %v114_v14 = vld [vmem:[%s207_s0 + $0x2] sm:$0x1]  }
   0x8   :  { %s143_s19 = smov 24   ;;  %s144_s20 = smov 16   ;;  %v115_v15 = vld [vmem:[%s207_s0 + $0x1] sm:$0x1]   ;;  %vm27_vm4 = vcmask 851712   ;;  %vm33_vm5 = vcmask 786112  }
   0x9   :  { %s145_s0 = smov 8   ;;  %vm39_vm6 = vcmask 720512   ;;  %vm45_vm7 = vcmask 654912   ;;  %vm51_vm8 = vcmask 589312   ;;  %vm57_vm9 = vcmask 523712  }
   0xa   :  { %31 = vrot.lane.b32.xlu0 %v105_v4, %s135_s24  ;;  %37 = vrot.lane.b32.xlu1 %v106_v5, %s136_s25  ;;  %vm63_vm10 = vcmask 458112   ;;  %vm69_vm11 = vcmask 392512   ;;  %vm75_vm12 = vcmask 326912   ;;  %vm81_vm13 = vcmask 261312  }
   0xb   :  { %vm87_vm14 = vcmask 195712   ;;  %vm93_vm15 = vcmask 130112  }
   0xe   :  { %43 = vrot.lane.b32.xlu0 %v107_v7, %s137_s30  ;;  %49 = vrot.lane.b32.xlu1 %v108_v8, %s138_s2 }
  0x12   :  { %55 = vrot.lane.b32.xlu0 %v109_v9, %s139_s7  ;;  %61 = vrot.lane.b32.xlu1 %v110_v10, %s140_s8 }
  0x16   :  { %67 = vrot.lane.b32.xlu0 %v111_v11, %s141_s13  ;;  %73 = vrot.lane.b32.xlu1 %v112_v12, %s142_s14 }
  0x1a   :  { %79 = vrot.lane.b32.xlu0 %v113_v13, %s143_s19  ;;  %85 = vrot.lane.b32.xlu1 %v114_v14, %s144_s20 }
  0x1e   :  { %91 = vrot.lane.b32.xlu0 %v115_v15, %s145_s0 }
  0x74   :  { %v8_v16 = vpop.permute.xlu0 %7   ;;  %v20_v17 = vpop.permute.xlu1 %19  }
  0x75   :  { %10 = vst.msk [vmem:[#allocation0] sm:$0x1] %vm9_vm1, %v8_v16  }
  0x78   :  { %v14_v18 = vpop.permute.xlu0 %13   ;;  %v26_v19 = vpop.permute.xlu1 %25  }
  0x79   :  { %16 = vst.msk [vmem:[#allocation0] sm:$0x1] %vm15_vm2, %v14_v18  }
  0x7a   :  { %22 = vst.msk [vmem:[#allocation0] sm:$0x1] %vm21_vm3, %v20_v17  }
  0x7b   :  { %28 = vst.msk [vmem:[#allocation0] sm:$0x1] %vm27_vm4, %v26_v19  }
  0x7c   :  { %v32_v20 = vpop.permute.xlu0 %31   ;;  %v38_v21 = vpop.permute.xlu1 %37  }
  0x7d   :  { %34 = vst.msk [vmem:[#allocation0] sm:$0x1] %vm33_vm5, %v32_v20  }
  0x7e   :  { %40 = vst.msk [vmem:[#allocation0] sm:$0x1] %vm39_vm6, %v38_v21  }
  0x80   :  { %v44_v22 = vpop.permute.xlu0 %43   ;;  %v50_v23 = vpop.permute.xlu1 %49  }
  0x81   :  { %46 = vst.msk [vmem:[#allocation0] sm:$0x1] %vm45_vm7, %v44_v22  }
  0x82   :  { %52 = vst.msk [vmem:[#allocation0] sm:$0x1] %vm51_vm8, %v50_v23  }
  0x84   :  { %v56_v24 = vpop.permute.xlu0 %55   ;;  %v62_v25 = vpop.permute.xlu1 %61  }
  0x85   :  { %58 = vst.msk [vmem:[#allocation0] sm:$0x1] %vm57_vm9, %v56_v24  }
  0x86   :  { %64 = vst.msk [vmem:[#allocation0] sm:$0x1] %vm63_vm10, %v62_v25  }
  0x88   :  { %v68_v26 = vpop.permute.xlu0 %67   ;;  %v74_v27 = vpop.permute.xlu1 %73  }
  0x89   :  { %70 = vst.msk [vmem:[#allocation0] sm:$0x1] %vm69_vm11, %v68_v26  }
  0x8a   :  { %76 = vst.msk [vmem:[#allocation0] sm:$0x1] %vm75_vm12, %v74_v27  }
  0x8c   :  { %v80_v28 = vpop.permute.xlu0 %79   ;;  %v86_v29 = vpop.permute.xlu1 %85  }
  0x8d   :  { %82 = vst.msk [vmem:[#allocation0] sm:$0x1] %vm81_vm13, %v80_v28  }
  0x8e   :  { %88 = vst.msk [vmem:[#allocation0] sm:$0x1] %vm87_vm14, %v86_v29  }
  0x90   :  { %v92_v30 = vpop.permute.xlu0 %91  }
  0x91   :  { %94 = vst.msk [vmem:[#allocation0] sm:$0x1] %vm93_vm15, %v92_v30  }
  0x98   :  { %v98_v31 = vld [vmem:[#allocation0] sm:$0x1] }
  0x99   :  { %100 = vst [vmem:[%s208_s1] sm:$0x1] %v98_v31 }

// kernel: fourier_block_forward.2
= control target key start
LH: loop header
LB: loop body
LE: loop exit
PB: predicated region body
PF: predicated region fallthrough
CT: control target
= control target key end

     0   :  { %s1104_s18 = smov 0   ;;  %s1211_s0 = inlined_call_operand.vmem [shape: bf16[128,128], index: 0, kind: input, shape index: {}]   ;;  %s1212_s1 = inlined_call_operand.vmem [shape: bf16[128,128], index: 1, kind: input, shape index: {}]   ;;  %s1213_s2 = inlined_call_operand.vmem [shape: bf16[128,128], index: 2, kind: input, shape index: {}]   ;;  %s1214_s3 = inlined_call_operand.vmem [shape: bf16[128,128], index: 3, kind: input, shape index: {}]   ;;  %s1215_s4 = inlined_call_operand.vmem [shape: f32[128,128], index: 4, kind: output, shape index: {0}]   ;;  %s1216_s5 = inlined_call_operand.vmem [shape: f32[128,128], index: 5, kind: output, shape index: {1}]  }
   0x1 LB: > { %s843_s19 = sadd.s32 4294967295, %s1072_s18   ;;  %p847_p0 = scmp.ge.s32.totalorder %s1072_s18, 1  ;;  %s1072_s18 = sphi %s1104_s18, %s16_s18  }
   0x2   : > { %p202_p1 = scmp.lt.s32.totalorder %s1072_s18, 3 }
   0x4   : > { %p203_p2 = pnand %p847_p0, %p202_p1 }
   0x5   : > { %v1042_v0 = vld [vmem:[%s1213_s2] sm:$0xff] (!%p203_p2)   ;;  %s848_s22 = sshll.u32 (!%p203_p2), %s843_s19, 3  ;;  %v1043_v1 = vld [vmem:[%s1213_s2 + $0x8] sm:$0xff] (!%p203_p2)   ;;  %v1044_v2 = vld [vmem:[%s1213_s2 + $0x10] sm:$0xff] (!%p203_p2)  }
   0x6   : > { %206 = sbr.rel (%p203_p2) target bundleno = 296 (0x128), region = 36  ;;  %p241_p3 = scmp.lt.s32.totalorder (!%p203_p2), %s848_s22, 15  ;;  %930 = vmatprep.subr.bf16.mxu1 (!%p203_p2), %v1042_v0  ;;  %978 = vmatprep.subr.bf16.mxu0 (!%p203_p2), %v1042_v0  ;;  %v1045_v3 = vld [vmem:[%s1213_s2 + $0x18] sm:$0xff] (!%p203_p2)   ;;  %v1046_v6 = vld [vmem:[%s1213_s2 + $0x20] sm:$0xff] (!%p203_p2)   ;;  %v1047_v7 = vld [vmem:[%s1213_s2 + $0x28] sm:$0xff] (!%p203_p2)  }
   0x7   : > { %931 = vmatpush3.bf16.msra.mxu1 (!%p203_p2), %v1042_v0  ;;  %979 = vmatpush3.bf16.msra.mxu0 (!%p203_p2), %v1042_v0  ;;  %v1048_v8 = vld [vmem:[%s1213_s2 + $0x30] sm:$0xff] (!%p203_p2)   ;;  %v1049_v9 = vld [vmem:[%s1213_s2 + $0x38] sm:$0xff] (!%p203_p2)   ;;  %v1052_v10 = vld [vmem:[%s1214_s3] sm:$0xff] (!%p203_p2)  }
   0x8   : > { %932 = vmatprep.subr.bf16.mxu1 (!%p203_p2), %v1043_v1  ;;  %980 = vmatprep.subr.bf16.mxu0 (!%p203_p2), %v1043_v1  ;;  %v1055_v13 = vld [vmem:[%s1214_s3 + $0x8] sm:$0xff] (!%p203_p2)   ;;  %v1056_v16 = vld [vmem:[%s1214_s3 + $0x10] sm:$0xff] (!%p203_p2)   ;;  %v1057_v19 = vld [vmem:[%s1214_s3 + $0x18] sm:$0xff] (!%p203_p2)  }
   0x9   : > { %v1058_v20 = vld [vmem:[%s1214_s3 + $0x20] sm:$0xff] (!%p203_p2)   ;;  %v1060_v21 = vld [vmem:[%s1214_s3 + $0x28] sm:$0xff] (!%p203_p2)   ;;  %v1063_v22 = vld [vmem:[%s1214_s3 + $0x30] sm:$0xff] (!%p203_p2)  }
   0xa   : > { %v1065_v23 = vld [vmem:[%s1214_s3 + $0x38] sm:$0xff] (!%p203_p2)  }
   0xb   : > { %933 = vmatpush3.bf16.msra.mxu1 (!%p203_p2), %v1043_v1  ;;  %981 = vmatpush3.bf16.msra.mxu0 (!%p203_p2), %v1043_v1 }
   0xc   : > { %934 = vmatprep.subr.bf16.mxu1 (!%p203_p2), %v1044_v2  ;;  %982 = vmatprep.subr.bf16.mxu0 (!%p203_p2), %v1044_v2 }
   0xd   : > { %s1218_s22 = smov (!%p241_p3, %s848_s22), 15 }
   0xe   : > { %s849_s27 = sshll.u32 %s1218_s22, 2  ;;  %s853_s12 = sshll.u32 %s1218_s22, 3 }
   0xf   : > { %s1127_s30 = scalar_lea.vmem %s1211_s0, %s849_s27  ;;  %s1136_s10 = scalar_lea.vmem %s1212_s1, %s849_s27  ;;  %935 = vmatpush3.bf16.msra.mxu1 %v1044_v2  ;;  %983 = vmatpush3.bf16.msra.mxu0 %v1044_v2 }
  0x10   : > { %v1050_v4 = vld [vmem:[%s1127_s30] sm:$0xff]   ;;  %936 = vmatprep.subr.bf16.mxu1 %v1045_v3  ;;  %984 = vmatprep.subr.bf16.mxu0 %v1045_v3  ;;  %v1051_v11 = vld [vmem:[%s1127_s30 + $0x8] sm:$0xff]   ;;  %v1059_v14 = vld [vmem:[%s1127_s30 + $0x10] sm:$0xff]   ;;  %s1185_s15 = scalar_lea.vmem %s1216_s5, %s853_s12  ;;  %s1190_s19 = scalar_lea.vmem %s1215_s4, %s853_s12 }
  0x11   : > { %946 = vmatprep.mubr.bf16.mxu1 %v1050_v4  ;;  %v1053_v5 = vld [vmem:[%s1136_s10] sm:$0xff]   ;;  %v1054_v12 = vld [vmem:[%s1136_s10 + $0x8] sm:$0xff]   ;;  %v1062_v15 = vld [vmem:[%s1136_s10 + $0x10] sm:$0xff]  }
  0x12   : > { %994 = vmatprep.mubr.bf16.mxu0 %v1053_v5  ;;  %v1061_v17 = vld [vmem:[%s1127_s30 + $0x18] sm:$0xff]  }
  0x13   : > { %937 = vmatpush3.bf16.msra.mxu1 %v1045_v3  ;;  %985 = vmatpush3.bf16.msra.mxu0 %v1045_v3  ;;  %v1064_v18 = vld [vmem:[%s1136_s10 + $0x18] sm:$0xff]  }
  0x14   : > { %938 = vmatprep.subr.bf16.mxu1 %v1046_v6  ;;  %986 = vmatprep.subr.bf16.mxu0 %v1046_v6 }
  0x17   : > { %939 = vmatpush3.bf16.msra.mxu1 %v1046_v6  ;;  %987 = vmatpush3.bf16.msra.mxu0 %v1046_v6 }
  0x18   : > { %940 = vmatprep.subr.bf16.mxu1 %v1047_v7  ;;  %988 = vmatprep.subr.bf16.mxu0 %v1047_v7 }
  0x1b   : > { %941 = vmatpush3.bf16.msra.mxu1 %v1047_v7  ;;  %989 = vmatpush3.bf16.msra.mxu0 %v1047_v7 }
  0x1c   : > { %942 = vmatprep.subr.bf16.mxu1 %v1048_v8  ;;  %990 = vmatprep.subr.bf16.mxu0 %v1048_v8 }
  0x1f   : > { %943 = vmatpush3.bf16.msra.mxu1 %v1048_v8  ;;  %991 = vmatpush3.bf16.msra.mxu0 %v1048_v8 }
  0x20   : > { %944 = vmatprep.subr.bf16.mxu1 %v1049_v9  ;;  %992 = vmatprep.subr.bf16.mxu0 %v1049_v9 }
  0x23   : > { %945 = vmatpush3.bf16.msra.mxu1 %v1049_v9  ;;  %993 = vmatpush3.bf16.msra.mxu0 %v1049_v9 }
  0x24   : > { %954 = vmatprep.subr.bf16.mxu1 %v1052_v10  ;;  %1002 = vmatprep.subr.bf16.mxu0 %v1052_v10 }
  0x26   : > { %947 = vmatmul.mubr.bf16.vlgmr.msra.gmra.mrb[0].mxu1 %v1051_v11  ;;  %995 = vmatmul.mubr.bf16.vlgmr.msra.gmra.mrb[0].mxu0 %v1054_v12 }
  0x27   : > { %955 = vmatpush3.bf16.msra.mxu1 %v1052_v10  ;;  %1003 = vmatpush3.bf16.msra.mxu0 %v1052_v10 }
  0x28   : > { %956 = vmatprep.subr.bf16.mxu1 %v1055_v13  ;;  %1004 = vmatprep.subr.bf16.mxu0 %v1055_v13 }
  0x29   : > { %950 = vmatprep.mubr.bf16.mxu1 %v1059_v14  ;;  %998 = vmatprep.mubr.bf16.mxu0 %v1062_v15 }
  0x2b   : > { %957 = vmatpush3.bf16.msra.mxu1 %v1055_v13  ;;  %1005 = vmatpush3.bf16.msra.mxu0 %v1055_v13 }
  0x2c   : > { %958 = vmatprep.subr.bf16.mxu1 %v1056_v16  ;;  %1006 = vmatprep.subr.bf16.mxu0 %v1056_v16 }
  0x2e   : > { %951 = vmatmul.mubr.bf16.gmra.mrb[4].mxu1 %v1061_v17  ;;  %999 = vmatmul.mubr.bf16.gmra.mrb[4].mxu0 %v1064_v18 }
  0x2f   : > { %959 = vmatpush3.bf16.msra.mxu1 %v1056_v16  ;;  %1007 = vmatpush3.bf16.msra.mxu0 %v1056_v16 }
  0x30   : > { %960 = vmatprep.subr.bf16.mxu1 %v1057_v19  ;;  %1008 = vmatprep.subr.bf16.mxu0 %v1057_v19 }
  0x31   : > { %970 = vmatprep.mubr.bf16.mxu1 %v1053_v5  ;;  %1018 = vmatprep.mubr.bf16.mxu0 %v1050_v4 }
  0x33   : > { %961 = vmatpush3.bf16.msra.mxu1 %v1057_v19  ;;  %1009 = vmatpush3.bf16.msra.mxu0 %v1057_v19 }
  0x34   : > { %962 = vmatprep.subr.bf16.mxu1 %v1058_v20  ;;  %1010 = vmatprep.subr.bf16.mxu0 %v1058_v20 }
  0x37   : > { %963 = vmatpush3.bf16.msra.mxu1 %v1058_v20  ;;  %1011 = vmatpush3.bf16.msra.mxu0 %v1058_v20 }
  0x38   : > { %964 = vmatprep.subr.bf16.mxu1 %v1060_v21  ;;  %1012 = vmatprep.subr.bf16.mxu0 %v1060_v21 }
  0x3b   : > { %965 = vmatpush3.bf16.msra.mxu1 %v1060_v21  ;;  %1013 = vmatpush3.bf16.msra.mxu0 %v1060_v21 }
  0x3c   : > { %966 = vmatprep.subr.bf16.mxu1 %v1063_v22  ;;  %1014 = vmatprep.subr.bf16.mxu0 %v1063_v22 }
  0x3f   : > { %967 = vmatpush3.bf16.msra.mxu1 %v1063_v22  ;;  %1015 = vmatpush3.bf16.msra.mxu0 %v1063_v22 }
  0x40   : > { %968 = vmatprep.subr.bf16.mxu1 %v1065_v23  ;;  %1016 = vmatprep.subr.bf16.mxu0 %v1065_v23 }
  0x43   : > { %969 = vmatpush3.bf16.msra.mxu1 %v1065_v23  ;;  %1017 = vmatpush3.bf16.msra.mxu0 %v1065_v23 }
  0x46   : > { %971 = vmatmul.mubr.bf16.vlgmr.msra.gmra.mrb[8].mxu1 %v1054_v12  ;;  %1019 = vmatmul.mubr.bf16.vlgmr.msra.gmra.mrb[0].mxu0 %v1051_v11 }
  0x47   : > { %974 = vmatprep.mubr.bf16.mxu1 %v1062_v15  ;;  %1022 = vmatprep.mubr.bf16.mxu0 %v1059_v14 }
  0x4e   : > { %975 = vmatmul.mubr.bf16.gmra.mrb[12].mxu1 %v1064_v18  ;;  %1023 = vmatmul.mubr.bf16.gmra.mrb[4].mxu0 %v1061_v17 }
  0xf9   : > { %v948_v24 = vpop.f32.mrb[0].mxu1 }
  0xfa   : > { %v419_v25 = vpop.f32.mrb[1].mxu1 }
  0xfb   : > { %v949_v26 = vpop.f32.mrb[2].mxu1 }
  0xfc   : > { %v422_v27 = vpop.f32.mrb[3].mxu1 }
 0x101   : > { %v952_v28 = vpop.f32.mrb[4].mxu1 }
 0x102   : > { %v435_v29 = vpop.f32.mrb[5].mxu1 }
 0x103   : > { %v953_v30 = vpop.f32.mrb[6].mxu1 }
 0x104   : > { %v438_v31 = vpop.f32.mrb[7].mxu1 }
 0x119   : > { %v972_v32 = vpop.f32.mrb[8].mxu1  ;;  %v1020_v33 = vpop.f32.mrb[0].mxu0 }
 0x11a   : > { %v589_v34 = vsub.f32 %v948_v24, %v972_v32  ;;  %735 = vst [vmem:[%s1185_s15 + $0x10] sm:$0xff] %v1020_v33  ;;  %v556_v35 = vpop.f32.mrb[9].mxu1  ;;  %v702_v36 = vpop.f32.mrb[1].mxu0 }
 0x11b   : > { %v587_v37 = vsub.f32 %v419_v25, %v556_v35  ;;  %733 = vst [vmem:[%s1185_s15] sm:$0xff] %v702_v36  ;;  %v973_v38 = vpop.f32.mrb[10].mxu1  ;;  %v1021_v39 = vpop.f32.mrb[2].mxu0 }
 0x11c   : > { %597 = vst [vmem:[%s1190_s19 + $0x10] sm:$0xff] %v589_v34  ;;  %v590_v40 = vsub.f32 %v949_v26, %v973_v38  ;;  %736 = vst [vmem:[%s1185_s15 + $0x18] sm:$0xff] %v1021_v39  ;;  %v559_v41 = vpop.f32.mrb[11].mxu1  ;;  %v705_v42 = vpop.f32.mrb[3].mxu0 }
 0x11d   : > { %595 = vst [vmem:[%s1190_s19] sm:$0xff] %v587_v37  ;;  %v588_v43 = vsub.f32 %v422_v27, %v559_v41  ;;  %734 = vst [vmem:[%s1185_s15 + $0x8] sm:$0xff] %v705_v42 }
 0x11e   : > { %598 = vst [vmem:[%s1190_s19 + $0x18] sm:$0xff] %v590_v40 }
 0x11f   : > { %596 = vst [vmem:[%s1190_s19 + $0x8] sm:$0xff] %v588_v43 }
 0x121   : > { %v976_v44 = vpop.f32.mrb[12].mxu1  ;;  %v1024_v45 = vpop.f32.mrb[4].mxu0 }
 0x122   : > { %v593_v46 = vsub.f32 %v952_v28, %v976_v44  ;;  %739 = vst [vmem:[%s1185_s15 + $0x30] sm:$0xff] %v1024_v45  ;;  %v572_v47 = vpop.f32.mrb[13].mxu1  ;;  %v718_v48 = vpop.f32.mrb[5].mxu0 }
 0x123   : > { %v591_v49 = vsub.f32 %v435_v29, %v572_v47  ;;  %737 = vst [vmem:[%s1185_s15 + $0x20] sm:$0xff] %v718_v48  ;;  %v977_v50 = vpop.f32.mrb[14].mxu1  ;;  %v1025_v51 = vpop.f32.mrb[6].mxu0 }
 0x124   : > { %601 = vst [vmem:[%s1190_s19 + $0x30] sm:$0xff] %v593_v46  ;;  %v594_v52 = vsub.f32 %v953_v30, %v977_v50  ;;  %740 = vst [vmem:[%s1185_s15 + $0x38] sm:$0xff] %v1025_v51  ;;  %v575_v53 = vpop.f32.mrb[15].mxu1  ;;  %v721_v54 = vpop.f32.mrb[7].mxu0 }
 0x125   : > { %599 = vst [vmem:[%s1190_s19 + $0x20] sm:$0xff] %v591_v49  ;;  %v592_v55 = vsub.f32 %v438_v31, %v575_v53  ;;  %738 = vst [vmem:[%s1185_s15 + $0x28] sm:$0xff] %v721_v54 }
 0x126   : > { %602 = vst [vmem:[%s1190_s19 + $0x38] sm:$0xff] %v594_v52 }
 0x127   : > { %600 = vst [vmem:[%s1190_s19 + $0x28] sm:$0xff] %v592_v55 }
 0x128 PF: > { %s16_s18 = sadd.s32 1, %s1072_s18  }
 0x129   : > { %p13_p4 = scmp.ge.s32.totalorder %s16_s18, 4  }
 0x12b   :  { %15 = sbr.rel (!%p13_p4) target bundleno = 1 (0x1), region = 81 }

// kernel: reverse.1
= control target key start
LH: loop header
LB: loop body
LE: loop exit
PB: predicated region body
PF: predicated region fallthrough
CT: control target
= control target key end

     0   :  { %s296_s0 = inlined_call_operand.vmem [shape: f32[2,32,32,3], index: 0, kind: input, shape index: {}]   ;;  %s297_s1 = inlined_call_operand.vmem [shape: f32[2,32,32,3], index: 1, kind: output, shape index: {}]  }
   0x1   :  { %v96_v0 = vld [vmem:[%s296_s0 + $0x40] sm:$0xff]  ;;  %v106_v6 = vld [vmem:[%s296_s0 + $0x48] sm:$0xff]  ;;  %v118_v12 = vld [vmem:[%s296_s0 + $0x50] sm:$0xff] }
   0x2   :  { %v97_v1 = vld [vmem:[%s296_s0 + $0xa0] sm:$0xff]  ;;  %4 = vst [vmem:[%s297_s1] sm:$0xff] %v96_v0  ;;  %v108_v7 = vld [vmem:[%s296_s0 + $0xa8] sm:$0xff]  ;;  %107 = vst [vmem:[%s297_s1 + $0x8] sm:$0xff] %v106_v6 }
   0x3   :  { %v99_v2 = vld [vmem:[%s296_s0 + $0x20] sm:$0xff]  ;;  %98 = vst [vmem:[%s297_s1 + $0x60] sm:$0xff] %v97_v1  ;;  %v110_v8 = vld [vmem:[%s296_s0 + $0x28] sm:$0xff]  ;;  %109 = vst [vmem:[%s297_s1 + $0x68] sm:$0xff] %v108_v7 }
   0x4   :  { %100 = vst [vmem:[%s297_s1 + $0x20] sm:$0xff] %v99_v2  ;;  %v101_v3 = vld [vmem:[%s296_s0 + $0x80] sm:$0xff]  ;;  %111 = vst [vmem:[%s297_s1 + $0x28] sm:$0xff] %v110_v8  ;;  %v112_v9 = vld [vmem:[%s296_s0 + $0x88] sm:$0xff] }
   0x5   :  { %v17_v4 = vld [vmem:[%s296_s0] sm:$0xff]  ;;  %102 = vst [vmem:[%s297_s1 + $0x80] sm:$0xff] %v101_v3  ;;  %v114_v10 = vld [vmem:[%s296_s0 + $0x8] sm:$0xff]  ;;  %113 = vst [vmem:[%s297_s1 + $0x88] sm:$0xff] %v112_v9 }
   0x6   :  { %v104_v5 = vld [vmem:[%s296_s0 + $0x60] sm:$0xff]  ;;  %103 = vst [vmem:[%s297_s1 + $0x40] sm:$0xff] %v17_v4  ;;  %v116_v11 = vld [vmem:[%s296_s0 + $0x68] sm:$0xff]  ;;  %115 = vst [vmem:[%s297_s1 + $0x48] sm:$0xff] %v114_v10 }
   0x7   :  { %105 = vst [vmem:[%s297_s1 + $0xa0] sm:$0xff] %v104_v5  ;;  %117 = vst [vmem:[%s297_s1 + $0xa8] sm:$0xff] %v116_v11  ;;  %v120_v13 = vld [vmem:[%s296_s0 + $0xb0] sm:$0xff]  ;;  %v130_v18 = vld [vmem:[%s296_s0 + $0x58] sm:$0xff] }
   0x8   :  { %v122_v14 = vld [vmem:[%s296_s0 + $0x30] sm:$0xff]  ;;  %119 = vst [vmem:[%s297_s1 + $0x10] sm:$0xff] %v118_v12  ;;  %121 = vst [vmem:[%s297_s1 + $0x70] sm:$0xff] %v120_v13  ;;  %v132_v19 = vld [vmem:[%s296_s0 + $0xb8] sm:$0xff] }
   0x9   :  { %123 = vst [vmem:[%s297_s1 + $0x30] sm:$0xff] %v122_v14  ;;  %v124_v15 = vld [vmem:[%s296_s0 + $0x90] sm:$0xff]  ;;  %v134_v20 = vld [vmem:[%s296_s0 + $0x38] sm:$0xff]  ;;  %131 = vst [vmem:[%s297_s1 + $0x18] sm:$0xff] %v130_v18 }
   0xa   :  { %v126_v16 = vld [vmem:[%s296_s0 + $0x10] sm:$0xff]  ;;  %125 = vst [vmem:[%s297_s1 + $0x90] sm:$0xff] %v124_v15  ;;  %133 = vst [vmem:[%s297_s1 + $0x78] sm:$0xff] %v132_v19  ;;  %v136_v21 = vld [vmem:[%s296_s0 + $0x98] sm:$0xff] }
   0xb   :  { %v128_v17 = vld [vmem:[%s296_s0 + $0x70] sm:$0xff]  ;;  %127 = vst [vmem:[%s297_s1 + $0x50] sm:$0xff] %v126_v16  ;;  %135 = vst [vmem:[%s297_s1 + $0x38] sm:$0xff] %v134_v20  ;;  %v138_v22 = vld [vmem:[%s296_s0 + $0x18] sm:$0xff] }
   0xc   :  { %129 = vst [vmem:[%s297_s1 + $0xb0] sm:$0xff] %v128_v17  ;;  %v140_v23 = vld [vmem:[%s296_s0 + $0x78] sm:$0xff]  ;;  %137 = vst [vmem:[%s297_s1 + $0x98] sm:$0xff] %v136_v21 }
   0xd   :  { %139 = vst [vmem:[%s297_s1 + $0x58] sm:$0xff] %v138_v22  ;;  %141 = vst [vmem:[%s297_s1 + $0xb8] sm:$0xff] %v140_v23 }

// kernel: fourier_block_forward.3
= control target key start
LH: loop header
LB: loop body
LE: loop exit
PB: predicated region body
PF: predicated region fallthrough
CT: control target
= control target key end

     0   :  { %s671_s15 = smov 0   ;;  %s752_s0 = inlined_call_operand.vmem [shape: bf16[128,128], index: 0, kind: input, shape index: {}]   ;;  %s753_s1 = inlined_call_operand.vmem [shape: bf16[128,128], index: 1, kind: input, shape index: {}]   ;;  %s754_s2 = inlined_call_operand.vmem [shape: f32[1,128], index: 2, kind: input, shape index: {}]   ;;  %s755_s3 = inlined_call_operand.vmem [shape: f32[128,128], index: 3, kind: input, shape index: {}]   ;;  %s756_s4 = inlined_call_operand.vmem [shape: f32[128,128], index: 4, kind: output, shape index: {}]  }
   0x1 LB: > { %s524_s16 = sadd.s32 4294967295, %s644_s15   ;;  %p528_p0 = scmp.ge.s32.totalorder %s644_s15, 1  ;;  %s644_s15 = sphi %s671_s15, %s14_s15  }
   0x2   : > { %p174_p1 = scmp.lt.s32.totalorder %s644_s15, 3 }
   0x4   : > { %p175_p2 = pnand %p528_p0, %p174_p1 }
   0x5   : > { %v610_v0 = vld [vmem:[%s753_s1] sm:$0xff] (!%p175_p2)   ;;  %s529_s19 = sshll.u32 (!%p175_p2), %s524_s16, 3  ;;  %v611_v1 = vld [vmem:[%s753_s1 + $0x8] sm:$0xff] (!%p175_p2)   ;;  %v612_v2 = vld [vmem:[%s753_s1 + $0x10] sm:$0xff] (!%p175_p2)  }
   0x6   : > { %178 = sbr.rel (%p175_p2) target bundleno = 279 (0x117), region = 36  ;;  %p206_p3 = scmp.lt.s32.totalorder (!%p175_p2), %s529_s19, 15  ;;  %562 = vmatprep.subr.bf16.mxu0 (!%p175_p2), %v610_v0  ;;  %586 = vmatprep.subr.bf16.mxu1 (!%p175_p2), %v610_v0  ;;  %v613_v3 = vld [vmem:[%s753_s1 + $0x18] sm:$0xff] (!%p175_p2)   ;;  %v614_v6 = vld [vmem:[%s753_s1 + $0x20] sm:$0xff] (!%p175_p2)   ;;  %v615_v7 = vld [vmem:[%s753_s1 + $0x28] sm:$0xff] (!%p175_p2)  }
   0x7   : > { %563 = vmatpush3.bf16.msra.mxu0 (!%p175_p2), %v610_v0  ;;  %594 = vmatpush3.bf16.msra.mxu1 (!%p175_p2), %v610_v0  ;;  %v616_v8 = vld [vmem:[%s753_s1 + $0x30] sm:$0xff] (!%p175_p2)   ;;  %v617_v9 = vld [vmem:[%s753_s1 + $0x38] sm:$0xff] (!%p175_p2)   ;;  %v535_v12 = vld [vmem:[%s754_s2] ss:$0 sm:$0xff] (!%p175_p2) }
   0x8   : > { %564 = vmatprep.subr.bf16.mxu0 (!%p175_p2), %v611_v1  ;;  %587 = vmatprep.subr.bf16.mxu1 (!%p175_p2), %v611_v1 }
   0xb   : > { %565 = vmatpush3.bf16.msra.mxu0 (!%p175_p2), %v611_v1  ;;  %595 = vmatpush3.bf16.msra.mxu1 (!%p175_p2), %v611_v1 }
   0xc   : > { %566 = vmatprep.subr.bf16.mxu0 (!%p175_p2), %v612_v2  ;;  %588 = vmatprep.subr.bf16.mxu1 (!%p175_p2), %v612_v2 }
   0xd   : > { %s758_s19 = smov (!%p206_p3, %s529_s19), 15 }
   0xe   : > { %s530_s24 = sshll.u32 %s758_s19, 2  ;;  %s532_s12 = sshll.u32 %s758_s19, 3 }
   0xf   : > { %s694_s27 = scalar_lea.vmem %s752_s0, %s530_s24  ;;  %567 = vmatpush3.bf16.msra.mxu0 %v612_v2  ;;  %596 = vmatpush3.bf16.msra.mxu1 %v612_v2  ;;  %s721_s16 = scalar_lea.vmem %s755_s3, %s532_s12 }
  0x10   : > { %v618_v4 = vld [vmem:[%s694_s27] sm:$0xff]   ;;  %v619_v5 = vld [vmem:[%s694_s27 + $0x10] sm:$0xff]   ;;  %568 = vmatprep.subr.bf16.mxu0 %v613_v3  ;;  %589 = vmatprep.subr.bf16.mxu1 %v613_v3  ;;  %v620_v10 = vld [vmem:[%s694_s27 + $0x8] sm:$0xff]   ;;  %s739_s22 = scalar_lea.vmem %s756_s4, %s532_s12 }
  0x11   : > { %578 = vmatprep.mubr.bf16.mxu0 %v618_v4  ;;  %582 = vmatprep.mubr.bf16.mxu1 %v619_v5  ;;  %v621_v11 = vld [vmem:[%s694_s27 + $0x18] sm:$0xff]   ;;  %v394_v14 = vld [vmem:[%s721_s16 + $0x10] sm:$0xff]  ;;  %v392_v20 = vld [vmem:[%s721_s16] sm:$0xff] }
  0x12   : > { %v398_v16 = vld [vmem:[%s721_s16 + $0x30] sm:$0xff]  ;;  %v396_v22 = vld [vmem:[%s721_s16 + $0x20] sm:$0xff]  ;;  %v395_v35 = vld [vmem:[%s721_s16 + $0x18] sm:$0xff] }
  0x13   : > { %569 = vmatpush3.bf16.msra.mxu0 %v613_v3  ;;  %597 = vmatpush3.bf16.msra.mxu1 %v613_v3  ;;  %v399_v36 = vld [vmem:[%s721_s16 + $0x38] sm:$0xff]  ;;  %v393_v38 = vld [vmem:[%s721_s16 + $0x8] sm:$0xff] }
  0x14   : > { %570 = vmatprep.subr.bf16.mxu0 %v614_v6  ;;  %590 = vmatprep.subr.bf16.mxu1 %v614_v6  ;;  %v397_v42 = vld [vmem:[%s721_s16 + $0x28] sm:$0xff] }
  0x17   : > { %571 = vmatpush3.bf16.msra.mxu0 %v614_v6  ;;  %598 = vmatpush3.bf16.msra.mxu1 %v614_v6 }
  0x18   : > { %572 = vmatprep.subr.bf16.mxu0 %v615_v7  ;;  %591 = vmatprep.subr.bf16.mxu1 %v615_v7 }
  0x1b   : > { %573 = vmatpush3.bf16.msra.mxu0 %v615_v7  ;;  %599 = vmatpush3.bf16.msra.mxu1 %v615_v7 }
  0x1c   : > { %574 = vmatprep.subr.bf16.mxu0 %v616_v8  ;;  %592 = vmatprep.subr.bf16.mxu1 %v616_v8 }
  0x1f   : > { %575 = vmatpush3.bf16.msra.mxu0 %v616_v8  ;;  %600 = vmatpush3.bf16.msra.mxu1 %v616_v8 }
  0x20   : > { %576 = vmatprep.subr.bf16.mxu0 %v617_v9  ;;  %593 = vmatprep.subr.bf16.mxu1 %v617_v9 }
  0x23   : > { %577 = vmatpush3.bf16.msra.mxu0 %v617_v9  ;;  %601 = vmatpush3.bf16.msra.mxu1 %v617_v9 }
  0x26   : > { %579 = vmatmul.mubr.bf16.vlgmr.msra.gmra.mrb[0].mxu0 %v620_v10  ;;  %583 = vmatmul.mubr.bf16.vlgmr.msra.gmra.mrb[0].mxu1 %v621_v11 }
  0xf9   : > { %v580_v13 = vpop.f32.mrb[0].mxu0  ;;  %v584_v15 = vpop.f32.mrb[0].mxu1 }
  0xfa   : > { %v370_v17 = vadd.f32 %v580_v13, %v535_v12  ;;  %v386_v18 = vadd.f32 %v584_v15, %v535_v12  ;;  %v361_v19 = vpop.f32.mrb[1].mxu0  ;;  %v377_v21 = vpop.f32.mrb[1].mxu1 }
  0xfb   : > { %v362_v23 = vadd.f32 %v535_v12, %v361_v19  ;;  %v378_v24 = vadd.f32 %v535_v12, %v377_v21  ;;  %v581_v25 = vpop.f32.mrb[2].mxu0  ;;  %v585_v26 = vpop.f32.mrb[2].mxu1 }
  0xfc   : > { %v402_v27 = vadd.f32 %v394_v14, %v370_v17  ;;  %v406_v28 = vadd.f32 %v398_v16, %v386_v18  ;;  %v373_v29 = vadd.f32 %v581_v25, %v535_v12  ;;  %v389_v30 = vadd.f32 %v585_v26, %v535_v12  ;;  %v364_v31 = vpop.f32.mrb[3].mxu0  ;;  %v380_v32 = vpop.f32.mrb[3].mxu1 }
  0xfd   : > { %v400_v33 = vadd.f32 %v392_v20, %v362_v23  ;;  %v404_v34 = vadd.f32 %v396_v22, %v378_v24  ;;  %v365_v37 = vadd.f32 %v535_v12, %v364_v31  ;;  %v381_v39 = vadd.f32 %v535_v12, %v380_v32 }
  0xfe   : > { %v418_v40 = vmul.f32 0.70710677, %v402_v27  ;;  %v422_v41 = vmul.f32 0.70710677, %v406_v28  ;;  %v403_v45 = vadd.f32 %v395_v35, %v373_v29  ;;  %v407_v46 = vadd.f32 %v399_v36, %v389_v30 }
  0xff   : > { %v416_v43 = vmul.f32 0.70710677, %v400_v33  ;;  %v420_v44 = vmul.f32 0.70710677, %v404_v34  ;;  %v401_v47 = vadd.f32 %v393_v38, %v365_v37  ;;  %v405_v48 = vadd.f32 %v397_v42, %v381_v39 }
 0x100   : > { %622 = verf.f32 %v418_v40  ;;  %v419_v49 = vmul.f32 0.70710677, %v403_v45  ;;  %v423_v50 = vmul.f32 0.70710677, %v407_v46  ;;  %v410_v55 = vmul.f32 0.5, %v402_v27 }
 0x101   : > { %624 = verf.f32 %v422_v41  ;;  %v417_v51 = vmul.f32 0.70710677, %v401_v47  ;;  %v421_v52 = vmul.f32 0.70710677, %v405_v48  ;;  %v414_v58 = vmul.f32 0.5, %v406_v28 }
 0x102   : > { %626 = verf.f32 %v416_v43  ;;  %v408_v62 = vmul.f32 0.5, %v400_v33  ;;  %v412_v2 = vmul.f32 0.5, %v404_v34  ;;  %v411_v6 = vmul.f32 0.5, %v403_v45 }
 0x103   : > { %628 = verf.f32 %v420_v44  ;;  %v415_v10 = vmul.f32 0.5, %v407_v46  ;;  %v409_v14 = vmul.f32 0.5, %v401_v47  ;;  %v413_v17 = vmul.f32 0.5, %v405_v48 }
 0x104   : > { %630 = verf.f32 %v419_v49 }
 0x105   : > { %632 = verf.f32 %v423_v50 }
 0x106   : > { %634 = verf.f32 %v417_v51 }
 0x107   : > { %636 = verf.f32 %v421_v52 }
 0x10a   : > { %v623_v53 = vpop.eup %622 }
 0x10b   : > { %v625_v54 = vpop.eup %624  ;;  %v434_v56 = vadd.f32 1.0, %v623_v53 }
 0x10c   : > { %v627_v57 = vpop.eup %626  ;;  %v438_v59 = vadd.f32 1.0, %v625_v54 }
 0x10d   : > { %v629_v60 = vpop.eup %628  ;;  %v442_v61 = vmul.f32 %v434_v56, %v410_v55  ;;  %v432_v63 = vadd.f32 1.0, %v627_v57 }
 0x10e   : > { %v631_v0 = vpop.eup %630  ;;  %v446_v1 = vmul.f32 %v438_v59, %v414_v58  ;;  %v436_v3 = vadd.f32 1.0, %v629_v60 }
 0x10f   : > { %v633_v4 = vpop.eup %632  ;;  %450 = vst [vmem:[%s739_s22 + $0x10] sm:$0xff] %v442_v61  ;;  %v440_v5 = vmul.f32 %v432_v63, %v408_v62  ;;  %v435_v7 = vadd.f32 1.0, %v631_v0 }
 0x110   : > { %v635_v8 = vpop.eup %634  ;;  %454 = vst [vmem:[%s739_s22 + $0x30] sm:$0xff] %v446_v1  ;;  %v444_v9 = vmul.f32 %v436_v3, %v412_v2  ;;  %v439_v11 = vadd.f32 1.0, %v633_v4 }
 0x111   : > { %v637_v12 = vpop.eup %636  ;;  %448 = vst [vmem:[%s739_s22] sm:$0xff] %v440_v5  ;;  %v443_v13 = vmul.f32 %v435_v7, %v411_v6  ;;  %v433_v15 = vadd.f32 1.0, %v635_v8 }
 0x112   : > { %452 = vst [vmem:[%s739_s22 + $0x20] sm:$0xff] %v444_v9  ;;  %v447_v16 = vmul.f32 %v439_v11, %v415_v10  ;;  %v437_v18 = vadd.f32 1.0, %v637_v12 }
 0x113   : > { %451 = vst [vmem:[%s739_s22 + $0x18] sm:$0xff] %v443_v13  ;;  %v441_v19 = vmul.f32 %v433_v15, %v409_v14 }
 0x114   : > { %455 = vst [vmem:[%s739_s22 + $0x38] sm:$0xff] %v447_v16  ;;  %v445_v20 = vmul.f32 %v437_v18, %v413_v17 }
 0x115   : > { %449 = vst [vmem:[%s739_s22 + $0x8] sm:$0xff] %v441_v19 }
 0x116   : > { %453 = vst [vmem:[%s739_s22 + $0x28] sm:$0xff] %v445_v20 }
 0x117 PF: > { %s14_s15 = sadd.s32 1, %s644_s15  }
 0x118   : > { %p11_p4 = scmp.ge.s32.totalorder %s14_s15, 4  }
 0x11a   :  { %13 = sbr.rel (!%p11_p4) target bundleno = 1 (0x1), region = 69 }

</bundles_post_ra>
